<compile_context>
chip_gen: v6e
topology: v6e:2x2x1
jax: 0.10.0
libtpu: 0.0.40
codegen_flags: <defaults>
</compile_context>

<pallas_src>
import functools

import jax
import jax.numpy as jnp
from jax.experimental import pallas as pl
from jax.experimental.pallas import tpu as pltpu


def _focal_block(logits_ref, tgt_ref, gamma):
    """Per-pixel focal loss for one (C, S, 128) block -> (S, 128) float32."""
    x = logits_ref[...].astype(jnp.float32)       # (C, S, 128): classes lead
    tgt = tgt_ref[...]                            # (S, 128) int32; -1 => padding
    c = x.shape[0]

    # Class max: C-1 elementwise maxima over full (8,128) vregs (no XLU).
    m = x[0]
    for k in range(1, c):
        m = jnp.maximum(m, x[k])

    # Single unrolled pass over classes: softmax denominator + one-hot gather
    # of the target's shifted logit and its exp (compare+select, no iota).
    sum_exp = jnp.zeros_like(m)
    z_t = jnp.zeros_like(m)
    e_t = jnp.zeros_like(m)
    matched = jnp.zeros(m.shape, dtype=jnp.bool_)
    for k in range(c):
        z_k = x[k] - m
        e_k = jnp.exp(z_k)
        sum_exp = sum_exp + e_k
        sel = tgt == k
        z_t = jnp.where(sel, z_k, z_t)
        e_t = jnp.where(sel, e_k, e_t)
        matched = jnp.logical_or(matched, sel)

    # log p[target]; pt reuses exp(z) (no second exp) + approx EUP reciprocal.
    logpt = jnp.minimum(z_t - jnp.log(sum_exp), 0.0)
    pt = e_t * pl.reciprocal(sum_exp, approx=True)
    w = jnp.maximum(1.0 - pt, 0.0)                # clamp approx-recip rounding

    g = float(gamma)
    if g == int(g) and 0 <= int(g) <= 8:
        wg = jnp.ones_like(w)
        for _ in range(int(g)):                   # integer gamma: VPU multiplies
            wg = wg * w
    else:
        # Epsilon guards pow(0, g) -> exp(g*log(0)) NaN for non-integer gamma.
        wg = jnp.power(jnp.maximum(w, 1e-12), g)

    focal = -(wg * logpt)
    # Padding / out-of-range targets never matched -> contribute exactly 0.
    return jnp.where(matched, focal, 0.0)


def _focal_sum_kernel(logits_ref, tgt_ref, out_ref, acc_ref, *, gamma):
    si = pl.program_id(2)

    @pl.when(si == 0)
    def _():
        acc_ref[...] = jnp.zeros_like(acc_ref)

    # Pure full-occupancy VPU accumulation every step.
    acc_ref[...] += _focal_block(logits_ref, tgt_ref, gamma)

    @pl.when(si == pl.num_programs(2) - 1)
    def _():
        # Single cross-lane/sublane reduce per (split, batch) in the epilogue.
        out_ref[...] = jnp.sum(acc_ref[...], keepdims=True)


def _focal_elem_kernel(logits_ref, tgt_ref, out_ref, *, gamma):
    out_ref[...] = _focal_block(logits_ref, tgt_ref, gamma)


def _choose_s_tile(n_rows, c, itemsize, target_bytes=2 << 20, max_rows=1024):
    """Sublane-tile rows: multiple of 8, ~target_bytes per (C, S, 128) block.

    ~2 MiB is a sweet spot for every generation: big enough to amortize the
    ~0.35 us/step overhead on mem-bound v5e/v6e, small enough (double
    buffered + temporaries) to leave headroom in v7x's 64 MiB VMEM.
    """
    cap = (target_bytes // max(1, c * 128 * itemsize)) // 8 * 8
    cap = max(8, min(cap, max_rows))
    need = -(-n_rows // 8) * 8
    return min(cap, need)


def focal_loss(logits, target, gamma=2.0, reduction="mean"):
    """Matches FocalLoss.forward: logits (B,C,H,W) [or (N,C)]; integer targets."""
    if logits.ndim > 2:
        b, c = logits.shape[0], logits.shape[1]
        hw = 1
        for d in logits.shape[2:]:
            hw *= int(d)
        x = logits.reshape(b, c, hw)                     # free reshape of NCHW
        t = target.reshape(b, hw).astype(jnp.int32)
    else:
        n, c = logits.shape
        b, hw = 1, int(n)
        # TODO(synk): this transpose costs an extra HBM read+write of logits;
        # if the 2-D path is hot, get class-major data from the producer.
        x = logits.T.reshape(1, c, hw)
        t = target.reshape(1, hw).astype(jnp.int32)
    # TODO(synk): int8 targets (valid for C<=127) would shave ~15% HBM traffic
    # on mem-bound v5e; kept int32 here for layout simplicity.

    n_valid = b * hw
    itemsize = jnp.dtype(x.dtype).itemsize
    n_rows = -(-hw // 128)                               # pixel rows of 128 lanes
    s_tile = _choose_s_tile(n_rows, c, itemsize)

    # v7x has 2 TensorCores: with B == 1 the batch "parallel" axis would idle
    # one core, so split the spatial reduction across a leading parallel axis
    # (per-core partials are summed in the wrapper).  No-op on v5e/v6e.
    n_split = 1
    if reduction != "none" and b == 1 and n_rows > 8:
        n_split = 2
        half_rows = -(-n_rows // 2)
        half_rows = -(-half_rows // 8) * 8
        s_tile = min(s_tile, half_rows)

    tiles = -(-n_rows // (s_tile * n_split)) * n_split   # total spatial tiles
    padded_hw = tiles * s_tile * 128
    if padded_hw != hw:
        x = jnp.pad(x, ((0, 0), (0, 0), (0, padded_hw - hw)))
        # target = -1 never matches any class k => padded focal term is 0.
        t = jnp.pad(t, ((0, 0), (0, padded_hw - hw)), constant_values=-1)

    # Free reshapes: pixel axis on (sublane, lane), class axis leading.
    x4 = x.reshape(b, c, padded_hw // 128, 128)
    t3 = t.reshape(b, padded_hw // 128, 128)

    cparams = pltpu.CompilerParams(
        dimension_semantics=(("parallel", "parallel")
                             if reduction == "none"
                             else ("parallel", "parallel", "arbitrary")),
        vmem_limit_bytes=32 * 1024 * 1024,   # v5e scoped default is only 16 MiB
    )

    if reduction == "none":
        per_elem = pl.pallas_call(
            functools.partial(_focal_elem_kernel, gamma=float(gamma)),
            out_shape=jax.ShapeDtypeStruct((b, padded_hw // 128, 128),
                                           jnp.float32),
            grid_spec=pltpu.PrefetchScalarGridSpec(
                num_scalar_prefetch=0,
                grid=(b, tiles),
                in_specs=[
                    pl.BlockSpec((None, c, s_tile, 128),
                                 lambda bi, si: (bi, 0, si, 0)),
                    pl.BlockSpec((None, s_tile, 128),
                                 lambda bi, si: (bi, si, 0)),
                ],
                out_specs=pl.BlockSpec((None, s_tile, 128),
                                       lambda bi, si: (bi, si, 0)),
            ),
            compiler_params=cparams,
        )(x4, t3)
        return per_elem.reshape(b, padded_hw)[:, :hw].reshape(-1)

    tiles_per_split = tiles // n_split
    partials = pl.pallas_call(
        functools.partial(_focal_sum_kernel, gamma=float(gamma)),
        out_shape=jax.ShapeDtypeStruct((n_split, b, 1, 1), jnp.float32),
        grid_spec=pltpu.PrefetchScalarGridSpec(
            num_scalar_prefetch=0,
            grid=(n_split, b, tiles_per_split),
            in_specs=[
                pl.BlockSpec(
                    (None, c, s_tile, 128),
                    lambda sp, bi, si: (bi, 0, sp * tiles_per_split + si, 0)),
                pl.BlockSpec(
                    (None, s_tile, 128),
                    lambda sp, bi, si: (bi, sp * tiles_per_split + si, 0)),
            ],
            out_specs=pl.BlockSpec((None, None, 1, 1),
                                   lambda sp, bi, si: (sp, bi, 0, 0)),
            scratch_shapes=[pltpu.VMEM((s_tile, 128), jnp.float32)],
        ),
        compiler_params=cparams,
    )(x4, t3)

    total = jnp.sum(partials)
    if reduction == "mean":
        return total / jnp.float32(n_valid)
    return total                                          # 'sum'


def _focal_loss_ref(logits, target, gamma=2.0, reduction="mean"):
    if logits.ndim > 2:
        logits = jnp.transpose(logits, (0, 2, 3, 1)).reshape(-1, logits.shape[1])
    target = target.reshape(-1).astype(jnp.int32)
    logp = jax.nn.log_softmax(logits.astype(jnp.float32), axis=-1)
    logpt = jnp.take_along_axis(logp, target[:, None], axis=1)[:, 0]
    pt = jnp.exp(logpt)
    fl = -((1.0 - pt) ** gamma) * logpt
    if reduction == "none":
        return fl
    if reduction == "mean":
        return jnp.mean(fl)
    return jnp.sum(fl)


if __name__ == "__main__":
    key = jax.random.PRNGKey(0)
    k1, k2, k3, k4, k5, k6 = jax.random.split(key, 6)

    # The in-kernel approx reciprocal trades a few ULPs of pt for one fewer
    # EUP exp per pixel, so compare at a slightly relaxed (still tight) tol.
    rtol = atol = 5e-3

    # 4-D NCHW case (as the PyTorch module expects for segmentation logits).
    B, C, H, W = 2, 4, 16, 16
    x = jax.random.normal(k1, (B, C, H, W), dtype=jnp.float32)
    y = jax.random.randint(k2, (B, H, W), 0, C, dtype=jnp.int32)

    out_mean = jax.block_until_ready(focal_loss(x, y, gamma=2.0, reduction="mean"))
    ref_mean = _focal_loss_ref(x, y, 2.0, "mean")
    assert jnp.allclose(out_mean, ref_mean, rtol=rtol, atol=atol), (out_mean, ref_mean)

    out_sum = jax.block_until_ready(focal_loss(x, y, gamma=2.0, reduction="sum"))
    ref_sum = _focal_loss_ref(x, y, 2.0, "sum")
    assert jnp.allclose(out_sum, ref_sum, rtol=rtol, atol=atol), (out_sum, ref_sum)

    out_none = jax.block_until_ready(focal_loss(x, y, gamma=2.0, reduction="none"))
    ref_none = _focal_loss_ref(x, y, 2.0, "none")
    assert out_none.shape == ref_none.shape, (out_none.shape, ref_none.shape)
    assert jnp.allclose(out_none, ref_none, rtol=rtol, atol=atol)

    # B == 1 case: exercises the two-TensorCore spatial split (n_split == 2).
    B1, C1, H1, W1 = 1, 4, 32, 64
    x1 = jax.random.normal(k3, (B1, C1, H1, W1), dtype=jnp.float32)
    y1 = jax.random.randint(k4, (B1, H1, W1), 0, C1, dtype=jnp.int32)
    out1 = jax.block_until_ready(focal_loss(x1, y1, gamma=2.0, reduction="mean"))
    ref1 = _focal_loss_ref(x1, y1, 2.0, "mean")
    assert jnp.allclose(out1, ref1, rtol=rtol, atol=atol), (out1, ref1)

    # 2-D (N, C) case with N not a multiple of 128 (exercises the padded tail).
    N2, C2 = 200, 4
    x2 = jax.random.normal(k5, (N2, C2), dtype=jnp.float32)
    y2 = jax.random.randint(k6, (N2,), 0, C2, dtype=jnp.int32)
    out2 = jax.block_until_ready(focal_loss(x2, y2, gamma=2.0, reduction="mean"))
    ref2 = _focal_loss_ref(x2, y2, 2.0, "mean")
    assert jnp.allclose(out2, ref2, rtol=rtol, atol=atol), (out2, ref2)

    print("KERNEL_OK")
</pallas_src>

<mosaic_0001>
module attributes {stable_mosaic.version = 11 : i64} {
  func.func @_focal_sum_kernel(%arg0: i32, %arg1: i32, %arg2: i32, %arg3: memref<1x4x8x128xf32, #tpu.memory_space<vmem>>, %arg4: memref<1x8x128xi32, #tpu.memory_space<vmem>>, %arg5: memref<1x1x1x1xf32, #tpu.memory_space<vmem>>, %arg6: memref<8x128xf32, #tpu.memory_space<vmem>>) attributes {dimension_semantics = [#tpu.dimension_semantics<parallel>, #tpu.dimension_semantics<parallel>, #tpu.dimension_semantics<arbitrary>], iteration_bounds = array<i64: 1, 2, 1>, scalar_prefetch = 0 : i64, scratch_operands = 1 : i64, tpu.core_type = #tpu.core_type<tc>, window_params = [{transform_indices = @transform_0, window_bounds = array<i64: 1, 4, 8, 128>}, {transform_indices = @transform_1, window_bounds = array<i64: 1, 8, 128>}, {transform_indices = @transform_2, window_bounds = array<i64: 1, 1, 1, 1>}]} {
    %c0_i32 = arith.constant 0 : i32
    %0 = arith.cmpi eq, %arg2, %c0_i32 : i32
    %1 = arith.extui %0 : i1 to i32
    %c0_i32_0 = arith.constant 0 : i32
    %2 = arith.cmpi ne, %1, %c0_i32_0 : i32
    scf.if %2 {
      %cst_22 = arith.constant 0.000000e+00 : f32
      %86 = vector.broadcast %cst_22 : f32 to vector<8x128xf32>
      %c0_23 = arith.constant 0 : index
      %c0_24 = arith.constant 0 : index
      %87 = vector.load %arg6[%c0_23, %c0_24] : memref<8x128xf32, #tpu.memory_space<vmem>>, vector<8x128xf32>
      tpu.vector_store %arg6[%c0_23, %c0_24], %86 {strides = array<i32>} : memref<8x128xf32, #tpu.memory_space<vmem>>, vector<8x128xf32>,
    } else {
    }
    %c0 = arith.constant 0 : index
    %c0_1 = arith.constant 0 : index
    %3 = vector.load %arg6[%c0, %c0_1] : memref<8x128xf32, #tpu.memory_space<vmem>>, vector<8x128xf32>
    %c0_2 = arith.constant 0 : index
    %c0_3 = arith.constant 0 : index
    %c0_4 = arith.constant 0 : index
    %c0_5 = arith.constant 0 : index
    %4 = vector.load %arg3[%c0_2, %c0_3, %c0_4, %c0_5] : memref<1x4x8x128xf32, #tpu.memory_space<vmem>>, vector<1x4x8x128xf32>
    %5 = vector.shape_cast %4 : vector<1x4x8x128xf32> to vector<4x8x128xf32>
    %c0_6 = arith.constant 0 : index
    %c0_7 = arith.constant 0 : index
    %c0_8 = arith.constant 0 : index
    %6 = vector.load %arg4[%c0_6, %c0_7, %c0_8] : memref<1x8x128xi32, #tpu.memory_space<vmem>>, vector<1x8x128xi32>
    %7 = vector.shape_cast %6 : vector<1x8x128xi32> to vector<8x128xi32>
    %8 = vector.extract_strided_slice %5 {offsets = [0, 0, 0], sizes = [1, 8, 128], strides = [1, 1, 1]} : vector<4x8x128xf32> to vector<1x8x128xf32>
    %9 = vector.shape_cast %8 : vector<1x8x128xf32> to vector<8x128xf32>
    %10 = vector.extract_strided_slice %5 {offsets = [1, 0, 0], sizes = [1, 8, 128], strides = [1, 1, 1]} : vector<4x8x128xf32> to vector<1x8x128xf32>
    %11 = vector.shape_cast %10 : vector<1x8x128xf32> to vector<8x128xf32>
    %12 = arith.maximumf %9, %11 : vector<8x128xf32>
    %13 = vector.extract_strided_slice %5 {offsets = [2, 0, 0], sizes = [1, 8, 128], strides = [1, 1, 1]} : vector<4x8x128xf32> to vector<1x8x128xf32>
    %14 = vector.shape_cast %13 : vector<1x8x128xf32> to vector<8x128xf32>
    %15 = arith.maximumf %12, %14 : vector<8x128xf32>
    %16 = vector.extract_strided_slice %5 {offsets = [3, 0, 0], sizes = [1, 8, 128], strides = [1, 1, 1]} : vector<4x8x128xf32> to vector<1x8x128xf32>
    %17 = vector.shape_cast %16 : vector<1x8x128xf32> to vector<8x128xf32>
    %18 = arith.maximumf %15, %17 : vector<8x128xf32>
    %cst = arith.constant 0.000000e+00 : f32
    %19 = vector.broadcast %cst : f32 to vector<8x128xf32>
    %cst_9 = arith.constant 0.000000e+00 : f32
    %20 = vector.broadcast %cst_9 : f32 to vector<8x128xf32>
    %cst_10 = arith.constant 0.000000e+00 : f32
    %21 = vector.broadcast %cst_10 : f32 to vector<8x128xf32>
    %false = arith.constant false
    %22 = vector.broadcast %false : i1 to vector<8x128xi1>
    %23 = vector.extract_strided_slice %5 {offsets = [0, 0, 0], sizes = [1, 8, 128], strides = [1, 1, 1]} : vector<4x8x128xf32> to vector<1x8x128xf32>
    %24 = vector.shape_cast %23 : vector<1x8x128xf32> to vector<8x128xf32>
    %25 = arith.subf %24, %18 : vector<8x128xf32>
    %26 = math.exp %25 : vector<8x128xf32>
    %27 = arith.addf %19, %26 : vector<8x128xf32>
    %c0_i32_11 = arith.constant 0 : i32
    %28 = vector.broadcast %c0_i32_11 : i32 to vector<8x128xi32>
    %29 = arith.cmpi eq, %7, %28 : vector<8x128xi32>
    %30 = arith.select %29, %25, %20 : vector<8x128xi1>, vector<8x128xf32>
    %31 = arith.select %29, %26, %21 : vector<8x128xi1>, vector<8x128xf32>
    %32 = arith.ori %22, %29 : vector<8x128xi1>
    %33 = vector.extract_strided_slice %5 {offsets = [1, 0, 0], sizes = [1, 8, 128], strides = [1, 1, 1]} : vector<4x8x128xf32> to vector<1x8x128xf32>
    %34 = vector.shape_cast %33 : vector<1x8x128xf32> to vector<8x128xf32>
    %35 = arith.subf %34, %18 : vector<8x128xf32>
    %36 = math.exp %35 : vector<8x128xf32>
    %37 = arith.addf %27, %36 : vector<8x128xf32>
    %c1_i32 = arith.constant 1 : i32
    %38 = vector.broadcast %c1_i32 : i32 to vector<8x128xi32>
    %39 = arith.cmpi eq, %7, %38 : vector<8x128xi32>
    %40 = arith.select %39, %35, %30 : vector<8x128xi1>, vector<8x128xf32>
    %41 = arith.select %39, %36, %31 : vector<8x128xi1>, vector<8x128xf32>
    %42 = arith.ori %32, %39 : vector<8x128xi1>
    %43 = vector.extract_strided_slice %5 {offsets = [2, 0, 0], sizes = [1, 8, 128], strides = [1, 1, 1]} : vector<4x8x128xf32> to vector<1x8x128xf32>
    %44 = vector.shape_cast %43 : vector<1x8x128xf32> to vector<8x128xf32>
    %45 = arith.subf %44, %18 : vector<8x128xf32>
    %46 = math.exp %45 : vector<8x128xf32>
    %47 = arith.addf %37, %46 : vector<8x128xf32>
    %c2_i32 = arith.constant 2 : i32
    %48 = vector.broadcast %c2_i32 : i32 to vector<8x128xi32>
    %49 = arith.cmpi eq, %7, %48 : vector<8x128xi32>
    %50 = arith.select %49, %45, %40 : vector<8x128xi1>, vector<8x128xf32>
    %51 = arith.select %49, %46, %41 : vector<8x128xi1>, vector<8x128xf32>
    %52 = arith.ori %42, %49 : vector<8x128xi1>
    %53 = vector.extract_strided_slice %5 {offsets = [3, 0, 0], sizes = [1, 8, 128], strides = [1, 1, 1]} : vector<4x8x128xf32> to vector<1x8x128xf32>
    %54 = vector.shape_cast %53 : vector<1x8x128xf32> to vector<8x128xf32>
    %55 = arith.subf %54, %18 : vector<8x128xf32>
    %56 = math.exp %55 : vector<8x128xf32>
    %57 = arith.addf %47, %56 : vector<8x128xf32>
    %c3_i32 = arith.constant 3 : i32
    %58 = vector.broadcast %c3_i32 : i32 to vector<8x128xi32>
    %59 = arith.cmpi eq, %7, %58 : vector<8x128xi32>
    %60 = arith.select %59, %55, %50 : vector<8x128xi1>, vector<8x128xf32>
    %61 = arith.select %59, %56, %51 : vector<8x128xi1>, vector<8x128xf32>
    %62 = arith.ori %52, %59 : vector<8x128xi1>
    %63 = math.log %57 : vector<8x128xf32>
    %64 = arith.subf %60, %63 : vector<8x128xf32>
    %cst_12 = arith.constant 0.000000e+00 : f32
    %65 = vector.broadcast %cst_12 : f32 to vector<8x128xf32>
    %66 = arith.minimumf %64, %65 : vector<8x128xf32>
    %67 = tpu.reciprocal %57 {approx = true} : vector<8x128xf32> -> vector<8x128xf32>
    %68 = arith.mulf %61, %67 : vector<8x128xf32>
    %cst_13 = arith.constant 1.000000e+00 : f32
    %69 = vector.broadcast %cst_13 : f32 to vector<8x128xf32>
    %70 = arith.subf %69, %68 : vector<8x128xf32>
    %cst_14 = arith.constant 0.000000e+00 : f32
    %71 = vector.broadcast %cst_14 : f32 to vector<8x128xf32>
    %72 = arith.maximumf %70, %71 : vector<8x128xf32>
    %cst_15 = arith.constant 1.000000e+00 : f32
    %73 = vector.broadcast %cst_15 : f32 to vector<8x128xf32>
    %74 = arith.mulf %73, %72 : vector<8x128xf32>
    %75 = arith.mulf %74, %72 : vector<8x128xf32>
    %76 = arith.mulf %75, %66 : vector<8x128xf32>
    %cst_16 = arith.constant 0.000000e+00 : f32
    %77 = vector.broadcast %cst_16 : f32 to vector<8x128xf32>
    %78 = arith.subf %77, %76 : vector<8x128xf32>
    %cst_17 = arith.constant 0.000000e+00 : f32
    %79 = vector.broadcast %cst_17 : f32 to vector<8x128xf32>
    %80 = arith.select %62, %78, %79 : vector<8x128xi1>, vector<8x128xf32>
    %81 = arith.addf %3, %80 : vector<8x128xf32>
    %c0_18 = arith.constant 0 : index
    %c0_19 = arith.constant 0 : index
    %82 = vector.load %arg6[%c0_18, %c0_19] : memref<8x128xf32, #tpu.memory_space<vmem>>, vector<8x128xf32>
    tpu.vector_store %arg6[%c0_18, %c0_19], %81 {strides = array<i32>} : memref<8x128xf32, #tpu.memory_space<vmem>>, vector<8x128xf32>,
    %c0_i32_20 = arith.constant 0 : i32
    %83 = arith.cmpi eq, %arg2, %c0_i32_20 : i32
    %84 = arith.extui %83 : i1 to i32
    %c0_i32_21 = arith.constant 0 : i32
    %85 = arith.cmpi ne, %84, %c0_i32_21 : i32
    scf.if %85 {
      %c0_22 = arith.constant 0 : index
      %c0_23 = arith.constant 0 : index
      %86 = vector.load %arg6[%c0_22, %c0_23] : memref<8x128xf32, #tpu.memory_space<vmem>>, vector<8x128xf32>
      %87 = vector.shape_cast %86 : vector<8x128xf32> to vector<1x8x128xf32>
      %cst_24 = arith.constant dense<0.000000e+00> : vector<1xf32>
      %88 = vector.multi_reduction <add>, %87, %cst_24 [1, 2] : vector<1x8x128xf32> to vector<1xf32>
      %89 = vector.shape_cast %88 : vector<1xf32> to vector<1x1x1xf32>
      %90 = vector.extract %89[0, 0, 0] : f32 from vector<1x1x1xf32>
      %91 = vector.broadcast %90 : f32 to vector<1x1xf32>
      %c0_25 = arith.constant 0 : index
      %c0_26 = arith.constant 0 : index
      %c0_27 = arith.constant 0 : index
      %c0_28 = arith.constant 0 : index
      %92 = vector.load %arg5[%c0_25, %c0_26, %c0_27, %c0_28] : memref<1x1x1x1xf32, #tpu.memory_space<vmem>>, vector<1x1x1x1xf32>
      %93 = vector.shape_cast %92 : vector<1x1x1x1xf32> to vector<1x1xf32>
      %94 = vector.shape_cast %91 : vector<1x1xf32> to vector<1x1x1x1xf32>
      tpu.vector_store %arg5[%c0_25, %c0_26, %c0_27, %c0_28], %94 {strides = array<i32>} : memref<1x1x1x1xf32, #tpu.memory_space<vmem>>, vector<1x1x1x1xf32>,
    } else {
    }
    return
  }
  func.func @transform_0(%arg0: i32, %arg1: i32, %arg2: i32) -> (i32, i32, i32, i32) {
    %c1_i32 = arith.constant 1 : i32
    %0 = arith.muli %arg0, %c1_i32 : i32
    %1 = arith.addi %0, %arg2 : i32
    %c0_i32 = arith.constant 0 : i32
    %c0_i32_0 = arith.constant 0 : i32
    %c0_i32_1 = arith.constant 0 : i32
    return %arg1, %c0_i32, %1, %c0_i32_0 : i32, i32, i32, i32
  }
  func.func @transform_1(%arg0: i32, %arg1: i32, %arg2: i32) -> (i32, i32, i32) {
    %c1_i32 = arith.constant 1 : i32
    %0 = arith.muli %arg0, %c1_i32 : i32
    %1 = arith.addi %0, %arg2 : i32
    %c0_i32 = arith.constant 0 : i32
    %c0_i32_0 = arith.constant 0 : i32
    return %arg1, %1, %c0_i32 : i32, i32, i32
  }
  func.func @transform_2(%arg0: i32, %arg1: i32, %arg2: i32) -> (i32, i32, i32, i32) {
    %c0_i32 = arith.constant 0 : i32
    %c0_i32_0 = arith.constant 0 : i32
    %c0_i32_1 = arith.constant 0 : i32
    return %arg0, %arg1, %c0_i32, %c0_i32_0 : i32, i32, i32, i32
  }
}

</mosaic_0001>

<bundles_post_ra>
// kernel: tpu_custom_call.1
= control target key start
LH: loop header
LB: loop body
LE: loop exit
PB: predicated region body
PF: predicated region fallthrough
CT: control target
= control target key end

     0   :  { %7 = vsyncpa [#allocation4], 0  ;;  %s787_s0 = inlined_call_operand.hbm [shape: f32[2,4,8,128], index: 0, kind: input, shape index: {}]   ;;  %s788_s1 = inlined_call_operand.hbm [shape: s32[2,8,128], index: 1, kind: input, shape index: {}]   ;;  %s789_s2 = inlined_call_operand.vmem [shape: f32[1,2,1,1], index: 2, kind: output, shape index: {}]  }
   0x1   :  { %9 = vsyncpa [#allocation4 + $0x1], 0 }
   0x2   :  { %10 = vsyncpa [#allocation6], 0 }
   0x3   :  { %12 = vsyncpa [#allocation6 + $0x1], 0  ;;  %s651_s9 = smov 0   ;;  %s653_s10 = smov 0  }
   0x4   :  { %s655_s11 = smov 0   ;;  %s657_s12 = smov 0  }
   0x5   :  { %s659_s13 = smov 0   ;;  %s661_s14 = smov 0  }
   0x6 LB: > { %s429_s15 = sadd.s32 4294967295, %s630_s14   ;;  %s33_s16 = sadd.s32 1, %s626_s13  ;;  %s630_s14 = sphi %s661_s14, %s18_s14   ;;  %s626_s13 = sphi %s659_s13, %s798_s13   ;;  %s622_s12 = sphi %s657_s12, %s797_s12   ;;  %s618_s11 = sphi %s655_s11, %s796_s11   ;;  %s614_s10 = sphi %s653_s10, %s795_s10   ;;  %s610_s9 = sphi %s651_s9, %s794_s9  }
   0x7   : > { %p35_p0 = scmp.ge.s32.totalorder %s33_s16, 2  ;;  %s48_s17 = sadd.s32 1, %s618_s11 }
   0x8   : > { %p55_p1 = scmp.ne.s32.totalorder %s618_s11, %s614_s10  ;;  %p56_p2 = scmp.eq.s32.totalorder %s630_s14, 0 }
   0x9   : > { %s800_s16 = smov (%p35_p0, %s33_s16), 0  ;;  %p61_p4 = scmp.ne.s32.totalorder %s614_s10, %s610_s9 }
   0xa   : > { %p687_p3 = por %p56_p2, %p55_p1  ;;  %s43_s19 = ssub.s32 %s626_s13, %s800_s16 }
   0xb   : > { %p62_p5 = scmp.eq.s32.totalorder %s429_s15, 0  ;;  %p46_p6 = scmp.eq.s32.totalorder %s43_s19, 0 }
   0xc   : > { %p457_p8 = scmp.lt.s32.totalorder %s630_s14, 2  ;;  %s703_s22 = sand.u32 1, %s618_s11  }
   0xd   : > { %p694_p7 = por %p62_p5, %p61_p4  ;;  %s443_s23 = sshll.u32 %s626_s13, 9 }
   0xe   : > { %s700_s21 = scalar_select %p46_p6, %s618_s11, %s48_s17  }
   0xf   : > { %s433_s24 = sshll.u32 %s703_s22, 5  ;;  %s155_s27 = scalar_lea.hbm %s787_s0, %s443_s23 }
  0x10   : > { %s147_s28 = scalar_lea.vmem [#allocation3], %s433_s24  ;;  %p712_p9 = pnand %p457_p8, %p687_p3 }
  0x11   : > { %s156_s29 = sshll.u32 %s147_s28, 4  ;;  %s144_s3 = scalar_lea.sflag [#allocation4], %s703_s22  ;;  %s157_s29 = int_to_ptr.vmem [resolvable:$true] %s156_s29 }
  0x12   : > { %p522_p10 = pneg %p712_p9  ;;  %s533_s4 = scalar_lea.vmem %s157_s29, 512 }
  0x13   : > { %p534_p11 = scmp.ne.s32.totalorder %s157_s29, %s533_s4  ;;  %s632_s5 = smov [#allocation3]  }
  0x14   : > { %s538_s6 = sshll.u32 %s632_s5, 4  ;;  %s539_s6 = int_to_ptr.vmem [resolvable:$false] %s538_s6 }
  0x15   : > { %p536_p12 = pnand %p534_p11, %p522_p10  ;;  %s540_s7 = scalar_lea.vmem %s539_s6, 1024 }
  0x16   : > { %p541_p0 = scmp.lt.s32.totalorder %s157_s29, %s539_s6  ;;  %p542_p1 = scmp.lt.s32.totalorder %s540_s7, %s533_s4 }
  0x17   : > { %p537_p13 = pneg %p536_p12 }
  0x18   : > { %p543_p2 = por %p542_p1, %p541_p0 }
  0x1a   : > { %p544_p3 = pnand %p543_p2, %p537_p13 }
  0x1c   : > { %547 = shalt.err (!%p544_p3)
}
  0x1d   : > { %s633_s8 = smov 128   ;;  %s634_s9 = smov 8  }
  0x1e   : > { %453 = dma.hbm_to_vmem [thread:$0]  (!%p712_p9), %s155_s27, 512, %s157_s29, %s144_s3, %s633_s8, %s633_s8, %s634_s9  }
  0x1f   : > { %p438_p4 = scmp.ge.s32.totalorder %s630_s14, 1  ;;  %p184_p5 = scmp.lt.s32.totalorder %s630_s14, 3 }
  0x20   : > { %s436_s15 = sshll.u32 %s703_s22, 3  ;;  %s437_s18 = sshll.u32 %s626_s13, 7 }
  0x21   : > { %p727_p6 = pnand %p438_p4, %p184_p5  ;;  %s170_s19 = scalar_lea.vmem [#allocation5], %s436_s15 }
  0x22   : > { %s179_s23 = sshll.u32 %s170_s19, 4  ;;  %s177_s26 = scalar_lea.hbm %s788_s1, %s437_s18  ;;  %s180_s23 = int_to_ptr.vmem [resolvable:$true] %s179_s23 }
  0x23   : > { %s167_s28 = scalar_lea.sflag [#allocation6], %s703_s22  ;;  %s561_s4 = scalar_lea.vmem %s180_s23, 128 }
  0x24   : > { %p562_p8 = scmp.ne.s32.totalorder %s180_s23, %s561_s4  ;;  %s635_s27 = smov [#allocation5]  }
  0x25   : > { %s566_s29 = sshll.u32 %s635_s27, 4  ;;  %s567_s29 = int_to_ptr.vmem [resolvable:$false] %s566_s29 }
  0x26   : > { %p564_p11 = pnand %p562_p8, %p522_p10  ;;  %s568_s3 = scalar_lea.vmem %s567_s29, 256 }
  0x27   : > { %p569_p13 = scmp.lt.s32.totalorder %s180_s23, %s567_s29  ;;  %p570_p0 = scmp.lt.s32.totalorder %s568_s3, %s561_s4 }
  0x28   : > { %p565_p12 = pneg %p564_p11 }
  0x29   : > { %p571_p1 = por %p570_p0, %p569_p13 }
  0x2b   : > { %p572_p2 = pnand %p571_p1, %p565_p12 }
  0x2d   : > { %575 = shalt.err (!%p572_p2)
}
  0x2e   : > { %456 = dma.hbm_to_vmem [thread:$0]  (!%p712_p9), %s177_s26, 128, %s180_s23, %s167_s28  }
  0x2f   : > { %188 = sbr.rel (%p727_p6) target bundleno = 318 (0x13e), region = 28  ;;  %s190_s22 = sand.u32 (!%p727_p6), 1, %s614_s10  }
  0x30   : > { %s439_s5 = sshll.u32 (!%p727_p6), %s190_s22, 5  ;;  %s191_s6 = scalar_lea.sflag (!%p727_p6), [#allocation4], %s190_s22 }
  0x31   : > { %s194_s7 = scalar_lea.vmem (!%p727_p6), [#allocation3], %s439_s5 }
  0x34   : > { %601 = dma.done.wait (%p694_p7), %s191_s6, 512  }
  0x35   : > { %603 = vsyncadd (%p694_p7), %s191_s6, 4294966784  ;;  %s440_s8 = sshll.u32 %s190_s22, 3  ;;  %s200_s9 = scalar_lea.sflag [#allocation6], %s190_s22 }
  0x36   : > { %s203_s15 = scalar_lea.vmem [#allocation5], %s440_s8 }
  0x37   : > { %605 = dma.done.wait (%p694_p7), %s200_s9, 128  }
  0x38   : > { %607 = vsyncadd (%p694_p7), %s200_s9, 4294967168  ;;  %v246_v0 = vld [vmem:[%s194_s7] sm:$0xff]  ;;  %v247_v1 = vld [vmem:[%s194_s7 + $0x8] sm:$0xff]  ;;  %p235_p7 = scmp.lt.s32.totalorder %s622_s12, 1  ;;  %vm313_vm7 = vcmask 0  }
  0x39   : > { %v248_v2 = vld [vmem:[%s194_s7 + $0x10] sm:$0xff]  ;;  %v251_v3 = vmax.f32 %v246_v0, %v247_v1  ;;  %v249_v4 = vld [vmem:[%s194_s7 + $0x18] sm:$0xff]  ;;  %v250_v21 = vld [vmem:[%s203_s15] sm:$0xff] }
  0x3a   : > { %vm258_vm0 = vcmp.eq.s32.totalorder %v250_v21, 0  ;;  %vm265_vm1 = vcmp.eq.s32.totalorder %v250_v21, 1  ;;  %vm273_vm2 = vcmp.eq.s32.totalorder %v250_v21, 2  ;;  %vm281_vm3 = vcmp.eq.s32.totalorder %v250_v21, 3  ;;  %s802_s12 = smov (!%p235_p7, %s622_s12), 1 }
  0x3b   : > { %v252_v5 = vmax.f32 %v251_v3, %v248_v2  ;;  %vm268_vm4 = vmor %vm258_vm0, %vm265_vm1  ;;  %s239_s17 = scalar_lea.vmem %s789_s2, %s802_s12 }
  0x3c   : > { %vm276_vm5 = vmor %vm268_vm4, %vm273_vm2 }
  0x3d   : > { %v253_v6 = vmax.f32 %v252_v5, %v249_v4  ;;  %vm284_vm6 = vmor %vm276_vm5, %vm281_vm3 }
  0x3f   : > { %v254_v7 = vsub.f32 %v246_v0, %v253_v6  ;;  %v261_v8 = vsub.f32 %v247_v1, %v253_v6  ;;  %v269_v9 = vsub.f32 %v248_v2, %v253_v6  ;;  %v277_v10 = vsub.f32 %v249_v4, %v253_v6 }
  0x41   : > { %v255_v11 = vmul.f32 1.442695, %v254_v7  ;;  %v262_v12 = vmul.f32 1.442695, %v261_v8  ;;  %v270_v13 = vmul.f32 1.442695, %v269_v9 }
  0x42   : > { %v278_v14 = vmul.f32 1.442695, %v277_v10  ;;  %v259_v24 = vsel %vm258_vm0, %v254_v7, 0.0 }
  0x43   : > { %508 = vpow2.f32 %v255_v11  ;;  %v266_v26 = vsel %vm265_vm1, %v261_v8, %v259_v24 }
  0x44   : > { %510 = vpow2.f32 %v262_v12  ;;  %v274_v28 = vsel %vm273_vm2, %v269_v9, %v266_v26 }
  0x45   : > { %512 = vpow2.f32 %v270_v13  ;;  %v282_v31 = vsel %vm281_vm3, %v277_v10, %v274_v28 }
  0x46   : > { %514 = vpow2.f32 %v278_v14 }
  0x50   : > { %v509_v15 = vpop.eup %508 }
  0x51   : > { %v511_v16 = vpop.eup %510  ;;  %v260_v23 = vsel %vm258_vm0, %v509_v15, 0.0 }
  0x52   : > { %v513_v17 = vpop.eup %512  ;;  %v264_v18 = vadd.f32 %v511_v16, %v509_v15  ;;  %v267_v25 = vsel %vm265_vm1, %v511_v16, %v260_v23 }
  0x53   : > { %v515_v19 = vpop.eup %514  ;;  %v275_v27 = vsel %vm273_vm2, %v513_v17, %v267_v25 }
  0x54   : > { %v272_v20 = vadd.f32 %v513_v17, %v264_v18  ;;  %v283_v29 = vsel %vm281_vm3, %v515_v19, %v275_v27 }
  0x56   : > { %v280_v22 = vadd.f32 %v515_v19, %v272_v20 }
  0x58   : > { %516 = vlog2.f32 %v280_v22 }
  0x59   : > { %518 = vrcp.f32 %v280_v22 }
  0x65   : > { %v517_v30 = vpop.eup %516 }
  0x66   : > { %v519_v32 = vpop.eup %518  ;;  %v286_v33 = vmul.f32 0.6931472, %v517_v30 }
  0x67   : > { %v290_v34 = vmul.f32 %v519_v32, %v283_v29 }
  0x68   : > { %v287_v35 = vsub.f32 %v282_v31, %v286_v33 }
  0x69   : > { %v291_v36 = vsub.f32 1.0, %v290_v34 }
  0x6a   : > { %v288_v37 = vmin.f32 %v287_v35, 0.0 }
  0x6b   : > { %v292_v38 = vmax.f32 %v291_v36, 0.0 }
  0x6d   : > { %v293_v39 = vmul.f32 %v292_v38, %v292_v38 }
  0x6f   : > { %v294_v40 = vmul.f32 %v293_v39, %v288_v37 }
  0x71   : > { %v295_v41 = vsub.f32 0.0, %v294_v40 }
  0x73   : > { %v296_v42 = vsel %vm284_vm6, %v295_v41, 0.0 }
  0x74   : > { %303 = vadd.xlane.f32.xlu0 %v296_v42 }
  0xfd   : > { %v304_v43 = vpop.xlane.xlu0 %303 }
  0xfe   : > { %v305_v44 = vrot.slane %v304_v43, 4 }
 0x100   : > { %v306_v45 = vadd.f32 %v305_v44, %v304_v43 }
 0x102   : > { %v307_v46 = vrot.slane %v306_v45, 2 }
 0x104   : > { %v308_v47 = vadd.f32 %v307_v46, %v306_v45 }
 0x106   : > { %v309_v48 = vrot.slane %v308_v47, 1 }
 0x108   : > { %v310_v49 = vadd.f32 %v309_v48, %v308_v47 }
 0x10a   : > { %444 = vpush %v310_v49 }
 0x13b   : > { %s445_s18 = spop %444 }
 0x13c   : > { %v312_v50 = vstv %s445_s18 }
 0x13d   : > { %314 = vst.msk [vmem:[%s239_s17] sm:$0x1] %vm313_vm7, %v312_v50 }
 0x13e PF: > { %s18_s14 = sadd.s32 1, %s630_s14   ;;  %s794_s9 = smov %s614_s10 }
 0x13f   : > { %p15_p9 = scmp.ge.s32.totalorder %s18_s14, 4   ;;  %s795_s10 = smov %s618_s11 }
 0x140   : > { %s796_s11 = smov %s700_s21  ;;  %s797_s12 = smov %s626_s13 }
 0x141   : > { %s798_s13 = smov %s800_s16  ;;  %17 = sbr.rel (!%p15_p9) target bundleno = 6 (0x6), region = 89 }
 0x146   :  { %340 = vsyncpa [#allocation4], 1 }
 0x147   :  { %342 = vsyncpa [#allocation4 + $0x1], 1 }
 0x148   :  { %343 = vsyncpa [#allocation6], 1 }
 0x149   :  { %345 = vsyncpa [#allocation6 + $0x1], 1 }

</bundles_post_ra>
